<compile_context>
chip_gen: v5e
topology: v5e:2x2
jax: 0.10.0
libtpu: 0.0.40
codegen_flags: <defaults>
</compile_context>

<pallas_src>
import functools
import math

import jax
import jax.numpy as jnp
from jax.experimental import pallas as pl
from jax.experimental.pallas import tpu as pltpu


# --------------------------------------------------------------------------
# Buffer construction (module __init__): build once, reuse for every call.
# --------------------------------------------------------------------------
def build_pe(d_model: int, max_len: int) -> jnp.ndarray:
    """Sinusoidal positional-encoding buffer, shape (max_len, d_model), fp32.

    Identical to the PyTorch module's `pe` buffer with the singleton batch
    axis squeezed (even d_model; sin on even cols, cos on odd cols).
    """
    position = jnp.arange(max_len, dtype=jnp.float32)[:, None]            # (L, 1)
    div_term = jnp.exp(
        jnp.arange(0, d_model, 2, dtype=jnp.float32) * (-math.log(10000.0) / d_model)
    )                                                                     # (d/2,)
    angles = position * div_term                                          # (L, d/2)
    pe = jnp.zeros((max_len, d_model), dtype=jnp.float32)
    pe = pe.at[:, 0::2].set(jnp.sin(angles))
    pe = pe.at[:, 1::2].set(jnp.cos(angles)[:, : d_model // 2])
    return pe


# --------------------------------------------------------------------------
# Kernels
# --------------------------------------------------------------------------
def _pe_add_kernel_3d(x_ref, pe_ref, o_ref):
    # x_ref: (TS, B, D); pe_ref: (TS, D) fp32.  Add in fp32, store in x dtype.
    x = x_ref[...].astype(jnp.float32)
    pe = pe_ref[...][:, None, :]
    o_ref[...] = (x + pe).astype(o_ref.dtype)


def _pe_add_kernel_flat(batch, x_ref, pe_ref, o_ref):
    # x_ref: (TS, B*D) lane-dense; pe_ref: (TS, D) fp32, replicated over batch
    # along the lane axis in-register (matches reshape(seq, B*D) ordering).
    x = x_ref[...].astype(jnp.float32)
    pe = pe_ref[...]
    if batch > 1:
        pe = jnp.tile(pe, (1, batch))
    o_ref[...] = (x + pe).astype(o_ref.dtype)


# --------------------------------------------------------------------------
# Tiling helpers
# --------------------------------------------------------------------------
def _vmem_limit_bytes() -> int:
    """Generation-aware scoped-VMEM request with ~25% headroom."""
    try:
        cap = int(pltpu.get_tpu_info().vmem_capacity_bytes)
    except Exception:
        cap = 64 << 20  # conservative (v7x-sized) fallback
    return max(32 << 20, min((cap * 3) // 4, 96 << 20))


def _seq_tile(seq: int, row_bytes: int, sub: int, budget_bytes: int) -> int:
    """Largest legal seq-tile fitting the double-buffered VMEM budget.

    Guarantees >=2 grid steps when seq allows it (v7x dual TensorCore + DMA
    overlap); rounds to the packed-sublane granularity `sub`.
    """
    ts = max(1, budget_bytes // max(row_bytes, 1))
    if ts >= seq:
        if seq >= 2 * sub:
            half = -(-seq // 2)                       # split into ~2 balanced tiles
            ts = ((half + sub - 1) // sub) * sub
            return min(ts, seq)
        return seq                                    # tiny seq: single full block
    ts = max(sub, (ts // sub) * sub)
    return min(ts, seq)


# --------------------------------------------------------------------------
# Forward wrapper
# --------------------------------------------------------------------------
def positional_encoding(x: jnp.ndarray, pe: jnp.ndarray) -> jnp.ndarray:
    """x: (seq, batch, d_model); pe: (max_len, d_model) fp32. Returns x + pe[:seq]."""
    seq, batch, d_model = x.shape
    max_len, pe_d = pe.shape
    if seq > max_len:
        raise ValueError(f"seq ({seq}) exceeds max_len ({max_len}) of the pe buffer")
    if pe_d != d_model:
        raise ValueError(f"pe d_model ({pe_d}) != x d_model ({d_model})")

    itemsize = x.dtype.itemsize
    sub_x = 8 * max(1, 4 // itemsize)          # packed sublane rows for x dtype
    flatten = (batch < sub_x) or (d_model % 128 != 0)
    sub = sub_x if flatten else 8              # seq-tile granularity requirement

    vmem_limit = _vmem_limit_bytes()
    budget = (vmem_limit * 3) // 4             # headroom for compiler scratch
    # per-seq-row bytes: 2x x-in + 2x out (double-buffered) + 2x fp32 pe + fp32 temp
    row_bytes = 4 * batch * d_model * itemsize + 8 * d_model + 4 * batch * d_model
    ts = _seq_tile(seq, row_bytes, sub, budget)
    grid = (pl.cdiv(seq, ts),)

    # pe is passed un-sliced (index_map only touches the first cdiv(seq,ts)
    # tiles).  Only the degenerate tiny/ragged-seq single-block case needs a
    # slice so pe's block equals its full dims.
    pe_in = pe if (ts % 8 == 0 or ts == max_len) else pe[:seq]

    cparams = pltpu.CompilerParams(
        dimension_semantics=("parallel",),
        vmem_limit_bytes=vmem_limit,
    )

    if flatten:
        feat = batch * d_model
        x2 = x.reshape(seq, feat)              # free, contiguous reshape
        out = pl.pallas_call(
            functools.partial(_pe_add_kernel_flat, batch),
            out_shape=jax.ShapeDtypeStruct((seq, feat), x.dtype),
            grid=grid,
            in_specs=[
                pl.BlockSpec((ts, feat), lambda i: (i, 0)),
                pl.BlockSpec((ts, d_model), lambda i: (i, 0)),
            ],
            out_specs=pl.BlockSpec((ts, feat), lambda i: (i, 0)),
            compiler_params=cparams,
        )(x2, pe_in)
        return out.reshape(seq, batch, d_model)

    return pl.pallas_call(
        _pe_add_kernel_3d,
        out_shape=jax.ShapeDtypeStruct((seq, batch, d_model), x.dtype),
        grid=grid,
        in_specs=[
            pl.BlockSpec((ts, batch, d_model), lambda i: (i, 0, 0)),
            pl.BlockSpec((ts, d_model), lambda i: (i, 0)),
        ],
        out_specs=pl.BlockSpec((ts, batch, d_model), lambda i: (i, 0, 0)),
        compiler_params=cparams,
    )(x, pe_in)


# --------------------------------------------------------------------------
# Demo / correctness check
# --------------------------------------------------------------------------
if __name__ == "__main__":
    key = jax.random.PRNGKey(0)

    # Case 1: module demo shape (small batch & d_model -> lane-dense flat path).
    d_model, max_len, seq, batch = 32, 16, 8, 2
    pe = build_pe(d_model, max_len)
    x = jax.random.normal(key, (seq, batch, d_model), dtype=jnp.float32)
    out = jax.block_until_ready(positional_encoding(x, pe))
    ref = x + pe[:seq][:, None, :]
    assert out.shape == (seq, batch, d_model)
    assert jnp.allclose(out, ref, atol=1e-6), "mismatch vs reference (flat path)"

    # Case 2: aligned shape (batch>=8, d_model%128==0 -> 3-D path, 2-step grid).
    d_model, max_len, seq, batch = 128, 32, 16, 8
    pe = build_pe(d_model, max_len)
    x = jax.random.normal(jax.random.PRNGKey(0), (seq, batch, d_model), dtype=jnp.float32)
    out = jax.block_until_ready(positional_encoding(x, pe))
    ref = x + pe[:seq][:, None, :]
    assert jnp.allclose(out, ref, atol=1e-6), "mismatch vs reference (3-D path)"

    # Case 3: ragged seq (not a multiple of 8) exercises the single-block fallback.
    d_model, max_len, seq, batch = 32, 16, 5, 2
    pe = build_pe(d_model, max_len)
    x = jax.random.normal(jax.random.PRNGKey(1), (seq, batch, d_model), dtype=jnp.float32)
    out = jax.block_until_ready(positional_encoding(x, pe))
    ref = x + pe[:seq][:, None, :]
    assert jnp.allclose(out, ref, atol=1e-6), "mismatch vs reference (ragged seq)"

    print("KERNEL_OK")
</pallas_src>

<mosaic_0001>
module attributes {stable_mosaic.version = 11 : i64} {
  func.func @_pe_add_kernel_flat(%arg0: i32, %arg1: memref<8x64xf32, #tpu.memory_space<vmem>>, %arg2: memref<8x32xf32, #tpu.memory_space<vmem>>, %arg3: memref<8x64xf32, #tpu.memory_space<vmem>>) attributes {dimension_semantics = [#tpu.dimension_semantics<parallel>], iteration_bounds = array<i64: 1>, scalar_prefetch = 0 : i64, scratch_operands = 0 : i64, tpu.core_type = #tpu.core_type<tc>, window_params = [{transform_indices = @transform_0, window_bounds = array<i64: 8, 64>}, {transform_indices = @transform_1, window_bounds = array<i64: 8, 32>}, {transform_indices = @transform_2, window_bounds = array<i64: 8, 64>}]} {
    %c0 = arith.constant 0 : index
    %c0_0 = arith.constant 0 : index
    %0 = vector.load %arg1[%c0, %c0_0] : memref<8x64xf32, #tpu.memory_space<vmem>>, vector<8x64xf32>
    %c0_1 = arith.constant 0 : index
    %c0_2 = arith.constant 0 : index
    %1 = vector.load %arg2[%c0_1, %c0_2] : memref<8x32xf32, #tpu.memory_space<vmem>>, vector<8x32xf32>
    %2 = tpu.concatenate %1, %1 in 1 : vector<8x32xf32>, vector<8x32xf32> -> vector<8x64xf32>
    %3 = arith.addf %0, %2 : vector<8x64xf32>
    %c0_3 = arith.constant 0 : index
    %c0_4 = arith.constant 0 : index
    %4 = vector.load %arg3[%c0_3, %c0_4] : memref<8x64xf32, #tpu.memory_space<vmem>>, vector<8x64xf32>
    tpu.vector_store %arg3[%c0_3, %c0_4], %3 {strides = array<i32>} : memref<8x64xf32, #tpu.memory_space<vmem>>, vector<8x64xf32>,
    return
  }
  func.func @transform_0(%arg0: i32) -> (i32, i32) {
    %c0_i32 = arith.constant 0 : i32
    %c0_i32_0 = arith.constant 0 : i32
    return %arg0, %c0_i32 : i32, i32
  }
  func.func @transform_1(%arg0: i32) -> (i32, i32) {
    %c0_i32 = arith.constant 0 : i32
    %c0_i32_0 = arith.constant 0 : i32
    return %arg0, %c0_i32 : i32, i32
  }
  func.func @transform_2(%arg0: i32) -> (i32, i32) {
    %c0_i32 = arith.constant 0 : i32
    %c0_i32_0 = arith.constant 0 : i32
    return %arg0, %c0_i32 : i32, i32
  }
}

</mosaic_0001>

<bundles_post_ra>
// kernel: tpu_custom_call.1
= control target key start
LH: loop header
LB: loop body
LE: loop exit
PB: predicated region body
PF: predicated region fallthrough
CT: control target
= control target key end

     0   :  { %7 = vsyncpa [#allocation3], 0  ;;  %s179_s0 = inlined_call_operand.hbm [shape: f32[8,64], index: 0, kind: input, shape index: {}]   ;;  %s180_s1 = inlined_call_operand.hbm [shape: f32[16,32], index: 1, kind: input, shape index: {}]   ;;  %s181_s2 = inlined_call_operand.hbm [shape: f32[8,64], index: 2, kind: output, shape index: {}]  }
   0x1   :  { %8 = vsyncpa [#allocation6], 0 }
   0x2   :  { %9 = vsyncpa [#allocation4], 0  ;;  %s15_s11 = sshll.u32 %s179_s0, 4  ;;  %s151_s12 = smov [#allocation2]   ;;  %s16_s11 = int_to_ptr.hbm [resolvable:$true] %s15_s11 }
   0x3   :  { %s17_s13 = sshll.u32 %s151_s12, 4  ;;  %s26_s16 = sshll.u32 %s180_s1, 4  ;;  %s18_s13 = int_to_ptr.vmem [resolvable:$true] %s17_s13  ;;  %s27_s16 = int_to_ptr.hbm [resolvable:$true] %s26_s16 }
   0x4   :  { %20 = dma.hbm_to_vmem [thread:$0]  %s16_s11, 128, %s18_s13, [#allocation3]  }
   0x5   :  { %s152_s17 = smov [#allocation5]  }
   0x6   :  { %s28_s18 = sshll.u32 %s152_s17, 4  ;;  %s29_s18 = int_to_ptr.vmem [resolvable:$true] %s28_s18 }
   0x7   :  { %31 = dma.hbm_to_vmem [thread:$0]  %s27_s16, 128, %s29_s18, [#allocation6]  }
   0x8   :  { %145 = dma.done.wait [#allocation3], 128  }
   0x9   :  { %146 = vsyncadd [#allocation3], 4294967168 }
   0xa   :  { %147 = dma.done.wait [#allocation6], 128  }
   0xb   :  { %148 = vsyncadd [#allocation6], 4294967168  ;;  %v41_v0 = vld [vmem:[#allocation5] sm:$0xff]  ;;  %s153_s0 = smov 32   ;;  %vm46_vm0 = vcmask 261120   ;;  %v40_v1 = vld [vmem:[#allocation2] sm:$0xff] }
   0xc   :  { %43 = vrot.lane.b32.xlu0 %v41_v0, %s153_s0  ;;  %s154_s19 = smov [#allocation7]   ;;  %s58_s1 = sshll.u32 %s181_s2, 4  ;;  %vm49_vm1 = vcmask 523264   ;;  %s59_s1 = int_to_ptr.hbm [resolvable:$true] %s58_s1 }
   0xd   :  { %s56_s20 = sshll.u32 %s154_s19, 4  ;;  %s57_s20 = int_to_ptr.vmem [resolvable:$true] %s56_s20 }
  0x7e   :  { %v44_v2 = vpop.permute.xlu0 %43 }
  0x7f   :  { %v47_v3 = vsel %vm46_vm0, %v41_v0, %v44_v2 }
  0x80   :  { %v48_v4 = vadd.f32 %v47_v3, %v40_v1 }
  0x82   :  { %50 = vst.msk [vmem:[#allocation7] sm:$0xff] %vm49_vm1, %v48_v4 }
  0x83   :  { %61 = dma.vmem_to_hbm [thread:$0]  %s57_s20, 128, %s59_s1, [#allocation4]  }
  0x84   :  { %149 = dma.done.wait [#allocation4], 128  }
  0x85   :  { %150 = vsyncadd [#allocation4], 4294967168 }
  0x86   :  { %66 = vsyncpa [#allocation3], 1 }
  0x87   :  { %67 = vsyncpa [#allocation6], 1 }
  0x88   :  { %68 = vsyncpa [#allocation4], 1 }

</bundles_post_ra>
